<compile_context>
chip_gen: v5e
topology: v5e:2x2
jax: 0.10.0
libtpu: 0.0.40
codegen_flags: <defaults>
</compile_context>

<pallas_src>
import functools

import jax
import jax.numpy as jnp
from jax.experimental import pallas as pl
from jax.experimental.pallas import tpu as pltpu

_LANES = 1024       # lane-dense last dim (multiple of 128)
_BLOCK_ROWS = 512   # 512 x 1024 f32 = 2 MiB per block


def _dropout_kernel(seed_ref, x_ref, o_ref, *, threshold: int, scale: float,
                    block_rows: int, ncols: int):
    pid = pl.program_id(0)
    shape = x_ref.shape

    # Global linear index of every element in this block (uint32; wrap is fine
    # for hashing — it only has to be unique mod 2^32).
    row = jax.lax.broadcasted_iota(jnp.int32, shape, 0).astype(jnp.uint32)
    col = jax.lax.broadcasted_iota(jnp.int32, shape, 1).astype(jnp.uint32)
    base = (pid * block_rows).astype(jnp.uint32)
    idx = (base + row) * jnp.uint32(ncols) + col

    # Counter-based PRNG: golden-ratio spread + lowbias32 finalizer.
    h = idx * jnp.uint32(0x9E3779B9) + seed_ref[0].astype(jnp.uint32)
    h = h ^ (h >> jnp.uint32(16))
    h = h * jnp.uint32(0x7FEB352D)
    h = h ^ (h >> jnp.uint32(15))
    h = h * jnp.uint32(0x846CA68B)
    h = h ^ (h >> jnp.uint32(16))

    # bernoulli(keep_prob) as a single integer compare (no float-uniform build).
    keep = h < jnp.uint32(threshold)

    x = x_ref[...]
    scaled = x * jnp.asarray(scale, dtype=x.dtype)   # native-dtype compute
    o_ref[...] = jnp.where(keep, scaled, jnp.zeros_like(scaled))


def custom_dropout(x: jax.Array, p: float, seed: int, training: bool = True) -> jax.Array:
    """Pallas implementation of CustomDropout.forward."""
    if not training or p == 0.0:
        return x
    if not (0.0 <= p < 1.0):
        raise ValueError("p must be in [0, 1)")

    keep_prob = 1.0 - p
    threshold = min(int(round(keep_prob * 2.0 ** 32)), 2 ** 32 - 1)
    scale = 1.0 / keep_prob

    orig_shape, orig_dtype = x.shape, x.dtype
    n = int(x.size)
    ncols = _LANES
    rows = -(-n // ncols)
    padded_n = rows * ncols

    # Pad only when the flat size is not a multiple of the lane width
    # (the common conv-activation path with n % 1024 == 0 stays pad/slice free).
    flat = x.reshape(-1)
    if padded_n != n:
        flat = jnp.pad(flat, (0, padded_n - n))
    x2d = flat.reshape(rows, ncols)

    # Single full-extent block for small inputs; tiled (512, 1024) blocks with
    # partial-last-block masking otherwise (no extra row padding needed).
    block_rows = rows if rows <= _BLOCK_ROWS else _BLOCK_ROWS
    num_blocks = -(-rows // block_rows)

    seed_arr = jnp.asarray([seed & 0x7FFFFFFF], dtype=jnp.int32)

    kernel = functools.partial(
        _dropout_kernel,
        threshold=threshold,
        scale=scale,
        block_rows=block_rows,
        ncols=ncols,
    )

    extra_kwargs = {}
    cp_cls = getattr(pltpu, "CompilerParams", None) or getattr(pltpu, "TPUCompilerParams", None)
    if cp_cls is not None:
        # Parallel grid axis: shards blocks across both TensorCores on v7x.
        extra_kwargs["compiler_params"] = cp_cls(dimension_semantics=("parallel",))
    if hasattr(pl, "CostEstimate"):
        extra_kwargs["cost_estimate"] = pl.CostEstimate(
            flops=3 * padded_n,
            transcendentals=0,
            bytes_accessed=2 * padded_n * x.dtype.itemsize,
        )

    out2d = pl.pallas_call(
        kernel,
        out_shape=jax.ShapeDtypeStruct((rows, ncols), orig_dtype),
        grid=(num_blocks,),
        in_specs=[
            pl.BlockSpec(memory_space=pltpu.MemorySpace.SMEM),     # seed scalar
            pl.BlockSpec((block_rows, ncols), lambda i: (i, 0)),   # x tile
        ],
        out_specs=pl.BlockSpec((block_rows, ncols), lambda i: (i, 0)),
        **extra_kwargs,
    )(seed_arr, x2d)

    if padded_n != n:
        return out2d.reshape(-1)[:n].reshape(orig_shape)
    return out2d.reshape(orig_shape)


if __name__ == "__main__":
    key = jax.random.PRNGKey(0)
    # Small NCHW input consistent with a conv-style pipeline.
    x = jax.random.normal(key, (2, 4, 16, 16), dtype=jnp.float32)

    p = 0.5
    out_train = custom_dropout(x, p=p, seed=1234, training=True)
    out_eval = custom_dropout(x, p=p, seed=1234, training=False)
    jax.block_until_ready(out_train)
    jax.block_until_ready(out_eval)

    # Sanity checks on dropout semantics.
    assert out_train.shape == x.shape and out_train.dtype == x.dtype
    # Eval mode is identity.
    assert bool(jnp.all(out_eval == x))
    # Surviving elements are scaled by exactly 1/(1-p); dropped ones are 0.
    mask = out_train != 0
    scaled_ok = jnp.where(mask, jnp.isclose(out_train, x / (1.0 - p), atol=1e-5), True)
    assert bool(jnp.all(scaled_ok))
    # Keep rate is roughly 1-p.
    keep_rate = float(jnp.mean(mask.astype(jnp.float32)))
    assert 0.3 < keep_rate < 0.7, keep_rate

    print("KERNEL_OK")
</pallas_src>

<mosaic_0001>
module attributes {stable_mosaic.version = 11 : i64} {
  func.func @_dropout_kernel(%arg0: i32, %arg1: memref<1xi32, #tpu.memory_space<smem>>, %arg2: memref<2x1024xf32, #tpu.memory_space<vmem>>, %arg3: memref<2x1024xf32, #tpu.memory_space<vmem>>) attributes {dimension_semantics = [#tpu.dimension_semantics<parallel>], iteration_bounds = array<i64: 1>, scalar_prefetch = 0 : i64, scratch_operands = 0 : i64, tpu.core_type = #tpu.core_type<tc>, window_params = [{transform_indices = @transform_0, window_bounds = array<i64: 1>}, {transform_indices = @transform_1, window_bounds = array<i64: 2, 1024>}, {transform_indices = @transform_2, window_bounds = array<i64: 2, 1024>}]} {
    %0 = tpu.iota {dimensions = array<i32: 0>} : vector<2x1024xi32>
    %1 = tpu.iota {dimensions = array<i32: 1>} : vector<2x1024xi32>
    %c2_i32 = arith.constant 2 : i32
    %2 = arith.muli %arg0, %c2_i32 : i32
    %3 = vector.broadcast %2 : i32 to vector<2x1024xi32>
    %4 = arith.addi %3, %0 : vector<2x1024xi32>
    %c1024_i32 = arith.constant 1024 : i32
    %5 = vector.broadcast %c1024_i32 : i32 to vector<2x1024xi32>
    %6 = arith.muli %4, %5 : vector<2x1024xi32>
    %7 = arith.addi %6, %1 : vector<2x1024xi32>
    %c-1640531527_i32 = arith.constant -1640531527 : i32
    %8 = vector.broadcast %c-1640531527_i32 : i32 to vector<2x1024xi32>
    %9 = arith.muli %7, %8 : vector<2x1024xi32>
    %c0 = arith.constant 0 : index
    %10 = memref.load %arg1[%c0] : memref<1xi32, #tpu.memory_space<smem>>
    %11 = vector.broadcast %10 : i32 to vector<2x1024xi32>
    %12 = arith.addi %9, %11 : vector<2x1024xi32>
    %c16_i32 = arith.constant 16 : i32
    %13 = vector.broadcast %c16_i32 : i32 to vector<2x1024xi32>
    %14 = arith.shrui %12, %13 : vector<2x1024xi32>
    %15 = arith.xori %12, %14 : vector<2x1024xi32>
    %c2146121005_i32 = arith.constant 2146121005 : i32
    %16 = vector.broadcast %c2146121005_i32 : i32 to vector<2x1024xi32>
    %17 = arith.muli %15, %16 : vector<2x1024xi32>
    %c15_i32 = arith.constant 15 : i32
    %18 = vector.broadcast %c15_i32 : i32 to vector<2x1024xi32>
    %19 = arith.shrui %17, %18 : vector<2x1024xi32>
    %20 = arith.xori %17, %19 : vector<2x1024xi32>
    %c-2073254261_i32 = arith.constant -2073254261 : i32
    %21 = vector.broadcast %c-2073254261_i32 : i32 to vector<2x1024xi32>
    %22 = arith.muli %20, %21 : vector<2x1024xi32>
    %c16_i32_0 = arith.constant 16 : i32
    %23 = vector.broadcast %c16_i32_0 : i32 to vector<2x1024xi32>
    %24 = arith.shrui %22, %23 : vector<2x1024xi32>
    %25 = arith.xori %22, %24 : vector<2x1024xi32>
    %c-2147483648_i32 = arith.constant -2147483648 : i32
    %26 = vector.broadcast %c-2147483648_i32 : i32 to vector<2x1024xi32>
    %27 = arith.cmpi ult, %25, %26 : vector<2x1024xi32>
    %c0_1 = arith.constant 0 : index
    %c0_2 = arith.constant 0 : index
    %28 = vector.load %arg2[%c0_1, %c0_2] : memref<2x1024xf32, #tpu.memory_space<vmem>>, vector<2x1024xf32>
    %cst = arith.constant 2.000000e+00 : f32
    %29 = vector.broadcast %cst : f32 to vector<2x1024xf32>
    %30 = arith.mulf %28, %29 : vector<2x1024xf32>
    %cst_3 = arith.constant 0.000000e+00 : f32
    %31 = vector.broadcast %cst_3 : f32 to vector<2x1024xf32>
    %32 = arith.select %27, %30, %31 : vector<2x1024xi1>, vector<2x1024xf32>
    %c0_4 = arith.constant 0 : index
    %c0_5 = arith.constant 0 : index
    %33 = vector.load %arg3[%c0_4, %c0_5] : memref<2x1024xf32, #tpu.memory_space<vmem>>, vector<2x1024xf32>
    tpu.vector_store %arg3[%c0_4, %c0_5], %32 {strides = array<i32>} : memref<2x1024xf32, #tpu.memory_space<vmem>>, vector<2x1024xf32>,
    return
  }
  func.func @transform_0(%arg0: i32) -> i32 {
    %c0_i32 = arith.constant 0 : i32
    %c0_i32_0 = arith.constant 0 : i32
    return %c0_i32 : i32
  }
  func.func @transform_1(%arg0: i32) -> (i32, i32) {
    %c0_i32 = arith.constant 0 : i32
    %c0_i32_0 = arith.constant 0 : i32
    return %arg0, %c0_i32 : i32, i32
  }
  func.func @transform_2(%arg0: i32) -> (i32, i32) {
    %c0_i32 = arith.constant 0 : i32
    %c0_i32_0 = arith.constant 0 : i32
    return %arg0, %c0_i32 : i32, i32
  }
}

</mosaic_0001>

<bundles_post_ra>
// kernel: tpu_custom_call.1
= control target key start
LH: loop header
LB: loop body
LE: loop exit
PB: predicated region body
PF: predicated region fallthrough
CT: control target
= control target key end

     0   :  { %8 = vsyncpa [#allocation4], 0  ;;  %s339_s0 = inlined_call_operand.<no memory space> [shape: s32[1], index: 0, kind: input, shape index: {}]   ;;  %s340_s1 = inlined_call_operand.hbm [shape: f32[2,1024], index: 1, kind: input, shape index: {}]   ;;  %s341_s2 = inlined_call_operand.hbm [shape: f32[2,1024], index: 2, kind: output, shape index: {}]  }
   0x1   :  { %9 = vsyncpa [#allocation5], 0  ;;  %s17_s11 = sshll.u32 %s340_s1, 4  ;;  %s295_s12 = smov [#allocation3]   ;;  %s18_s11 = int_to_ptr.hbm [resolvable:$true] %s17_s11 }
   0x2   :  { %s19_s13 = sshll.u32 %s295_s12, 4  ;;  %s20_s13 = int_to_ptr.vmem [resolvable:$true] %s19_s13 }
   0x3   :  { %22 = dma.hbm_to_vmem [thread:$0]  %s18_s11, 256, %s20_s13, [#allocation4]  }
   0x4   :  { %291 = dma.done.wait [#allocation4], 256  }
   0x5   :  { %292 = vsyncadd [#allocation4], 4294967040  ;;  %v27_v0 = vlaneseq  ;;  %v59_v3 = vstv %s339_s0  ;;  %v156_v16 = vld [vmem:[#allocation3] sm:$0xff]  ;;  %v157_v17 = vld [vmem:[#allocation3 + $0x8] sm:$0xff]  ;;  %vm203_vm0 = vcmask 1041408   ;;  %vm205_vm1 = vcmask 1045508  }
   0x6   :  { %v158_v22 = vmul.f32 2.0, %v156_v16  ;;  %v159_v23 = vmul.f32 2.0, %v157_v17  ;;  %vm207_vm2 = vcmask 1043456   ;;  %s296_s0 = smov [#allocation6]   ;;  %s223_s18 = sshll.u32 %s341_s2, 4  ;;  %s224_s18 = int_to_ptr.hbm [resolvable:$true] %s223_s18 }
   0x7   :  { %v28_v1 = vshrl.u32 %v27_v0, 7  ;;  %v30_v2 = vand.u32 127, %v27_v0  ;;  %s221_s1 = sshll.u32 %s296_s0, 4  ;;  %s222_s1 = int_to_ptr.vmem [resolvable:$true] %s221_s1 }
   0x8   :  { %162 = vst [vmem:[#allocation1] ss:$4 sm:$0xff] %v158_v22 }
   0x9   :  { %v31_v4 = vadd.s32 128, %v30_v2  ;;  %v32_v5 = vadd.s32 256, %v30_v2  ;;  %v33_v6 = vadd.s32 384, %v30_v2  ;;  %v41_v7 = vmul.u32 1024, %v28_v1  ;;  %164 = vst [vmem:[#allocation1 + $0x20] ss:$4 sm:$0xff] %v159_v23 }
   0xa   :  { %v34_v8 = vadd.s32 512, %v30_v2  ;;  %v35_v9 = vadd.s32 640, %v30_v2  ;;  %v36_v10 = vadd.s32 768, %v30_v2  ;;  %v37_v11 = vadd.s32 896, %v30_v2 }
   0xb   :  { %v42_v12 = vadd.s32 %v41_v7, %v30_v2  ;;  %v43_v13 = vadd.s32 %v41_v7, %v31_v4  ;;  %v44_v14 = vadd.s32 %v41_v7, %v32_v5  ;;  %v45_v15 = vadd.s32 %v41_v7, %v33_v6 }
   0xc   :  { %v46_v18 = vadd.s32 %v41_v7, %v34_v8  ;;  %v47_v19 = vadd.s32 %v41_v7, %v35_v9  ;;  %v48_v20 = vadd.s32 %v41_v7, %v36_v10  ;;  %v49_v21 = vadd.s32 %v41_v7, %v37_v11 }
   0xd   :  { %v50_v24 = vmul.u32 2654435769, %v42_v12  ;;  %v51_v25 = vmul.u32 2654435769, %v43_v13  ;;  %v52_v26 = vmul.u32 2654435769, %v44_v14 }
   0xe   :  { %v53_v27 = vmul.u32 2654435769, %v45_v15  ;;  %v54_v28 = vmul.u32 2654435769, %v46_v18  ;;  %v55_v31 = vmul.u32 2654435769, %v47_v19 }
   0xf   :  { %v60_v29 = vadd.s32 %v59_v3, %v50_v24  ;;  %v61_v30 = vadd.s32 %v59_v3, %v51_v25  ;;  %v56_v32 = vmul.u32 2654435769, %v48_v20  ;;  %v62_v33 = vadd.s32 %v59_v3, %v52_v26  ;;  %v165_v26 = vld.sshfl [vmem:[#allocation1] sm:$0xff pattern:$0x73625140] }
  0x10   :  { %v63_v34 = vadd.s32 %v59_v3, %v53_v27  ;;  %v57_v35 = vmul.u32 2654435769, %v49_v21  ;;  %v64_v36 = vadd.s32 %v59_v3, %v54_v28  ;;  %v65_v39 = vadd.s32 %v59_v3, %v55_v31  ;;  %v166_v27 = vld.sshfl [vmem:[#allocation1 + $0x8] sm:$0xff pattern:$0x73625140] }
  0x11   :  { %v68_v37 = vshrl.u32 %v60_v29, 16  ;;  %v69_v38 = vshrl.u32 %v61_v30, 16  ;;  %v66_v40 = vadd.s32 %v59_v3, %v56_v32  ;;  %v70_v41 = vshrl.u32 %v62_v33, 16  ;;  %v167_v32 = vld.sshfl [vmem:[#allocation1 + $0x10] sm:$0xff pattern:$0x73625140] }
  0x12   :  { %v71_v42 = vshrl.u32 %v63_v34, 16  ;;  %v67_v43 = vadd.s32 %v59_v3, %v57_v35  ;;  %v72_v44 = vshrl.u32 %v64_v36, 16  ;;  %v73_v47 = vshrl.u32 %v65_v39, 16 }
  0x13   :  { %v76_v45 = vxor.u32 %v68_v37, %v60_v29  ;;  %v77_v46 = vxor.u32 %v69_v38, %v61_v30  ;;  %v74_v48 = vshrl.u32 %v66_v40, 16  ;;  %v78_v49 = vxor.u32 %v70_v41, %v62_v33  ;;  %v168_v33 = vld.sshfl [vmem:[#allocation1 + $0x18] sm:$0xff pattern:$0x73625140] }
  0x14   :  { %v79_v50 = vxor.u32 %v71_v42, %v63_v34  ;;  %v75_v51 = vshrl.u32 %v67_v43, 16  ;;  %v80_v52 = vxor.u32 %v72_v44, %v64_v36  ;;  %v81_v55 = vxor.u32 %v73_v47, %v65_v39 }
  0x15   :  { %v84_v53 = vmul.u32 2146121005, %v76_v45  ;;  %v85_v54 = vmul.u32 2146121005, %v77_v46  ;;  %v86_v56 = vmul.u32 2146121005, %v78_v49  ;;  %v82_v58 = vxor.u32 %v74_v48, %v66_v40 }
  0x16   :  { %v87_v57 = vmul.u32 2146121005, %v79_v50  ;;  %v88_v59 = vmul.u32 2146121005, %v80_v52  ;;  %v83_v62 = vxor.u32 %v75_v51, %v67_v43  ;;  %v89_v6 = vmul.u32 2146121005, %v81_v55 }
  0x17   :  { %v92_v60 = vshrl.u32 %v84_v53, 15  ;;  %v93_v61 = vshrl.u32 %v85_v54, 15  ;;  %v94_v63 = vshrl.u32 %v86_v56, 15  ;;  %v90_v7 = vmul.u32 2146121005, %v82_v58 }
  0x18   :  { %v95_v0 = vshrl.u32 %v87_v57, 15  ;;  %v96_v1 = vshrl.u32 %v88_v59, 15  ;;  %v91_v10 = vmul.u32 2146121005, %v83_v62  ;;  %v97_v14 = vshrl.u32 %v89_v6, 15 }
  0x19   :  { %v100_v2 = vxor.u32 %v92_v60, %v84_v53  ;;  %v101_v3 = vxor.u32 %v93_v61, %v85_v54  ;;  %v102_v4 = vxor.u32 %v94_v63, %v86_v56  ;;  %v98_v15 = vshrl.u32 %v90_v7, 15  ;;  %v171_v60 = vld.sshfl [vmem:[#allocation1 + $0x30] sm:$0xff pattern:$0x73625140] }
  0x1a   :  { %v103_v5 = vxor.u32 %v95_v0, %v87_v57  ;;  %v104_v11 = vxor.u32 %v96_v1, %v88_v59  ;;  %v99_v18 = vshrl.u32 %v91_v10, 15  ;;  %v105_v22 = vxor.u32 %v97_v14, %v89_v6  ;;  %v170_v57 = vld.sshfl [vmem:[#allocation1 + $0x28] sm:$0xff pattern:$0x73625140] }
  0x1b   :  { %v108_v8 = vmul.u32 2221713035, %v100_v2  ;;  %v109_v9 = vmul.u32 2221713035, %v101_v3  ;;  %v110_v12 = vmul.u32 2221713035, %v102_v4  ;;  %v106_v23 = vxor.u32 %v98_v15, %v90_v7 }
  0x1c   :  { %v111_v13 = vmul.u32 2221713035, %v103_v5  ;;  %v112_v19 = vmul.u32 2221713035, %v104_v11  ;;  %v107_v28 = vxor.u32 %v99_v18, %v91_v10  ;;  %v113_v34 = vmul.u32 2221713035, %v105_v22 }
  0x1d   :  { %v116_v16 = vshrl.u32 %v108_v8, 16  ;;  %v117_v17 = vshrl.u32 %v109_v9, 16  ;;  %v118_v20 = vshrl.u32 %v110_v12, 16  ;;  %v114_v35 = vmul.u32 2221713035, %v106_v23 }
  0x1e   :  { %v119_v21 = vshrl.u32 %v111_v13, 16  ;;  %v120_v29 = vshrl.u32 %v112_v19, 16  ;;  %v115_v38 = vmul.u32 2221713035, %v107_v28  ;;  %v121_v42 = vshrl.u32 %v113_v34, 16 }
  0x1f   :  { %v124_v24 = vxor.u32 %v116_v16, %v108_v8  ;;  %v125_v25 = vxor.u32 %v117_v17, %v109_v9  ;;  %v126_v30 = vxor.u32 %v118_v20, %v110_v12  ;;  %v122_v43 = vshrl.u32 %v114_v35, 16  ;;  %v172_v0 = vld.sshfl [vmem:[#allocation1 + $0x38] sm:$0xff pattern:$0x73625140] }
  0x20   :  { %v127_v31 = vxor.u32 %v119_v21, %v111_v13  ;;  %v128_v39 = vxor.u32 %v120_v29, %v112_v19  ;;  %v123_v45 = vshrl.u32 %v115_v38, 16  ;;  %v129_v52 = vxor.u32 %v121_v42, %v113_v34  ;;  %v169_v3 = vld.sshfl [vmem:[#allocation1 + $0x20] sm:$0xff pattern:$0x73625140] }
  0x21   :  { %v233_v36 = vxor.u32 2147483648, %v124_v24  ;;  %v234_v37 = vxor.u32 2147483648, %v125_v25  ;;  %v235_v40 = vxor.u32 2147483648, %v126_v30  ;;  %v130_v55 = vxor.u32 %v122_v43, %v114_v35 }
  0x22   :  { %v236_v41 = vxor.u32 2147483648, %v127_v31  ;;  %v237_v46 = vxor.u32 2147483648, %v128_v39  ;;  %v131_v56 = vxor.u32 %v123_v45, %v115_v38  ;;  %v238_v59 = vxor.u32 2147483648, %v129_v52 }
  0x23   :  { %vm318_vm3 = vcmp.lt.s32.totalorder %v233_v36, 0  ;;  %vm137_vm4 = vcmp.lt.s32.totalorder %v234_v37, 0  ;;  %vm140_vm5 = vcmp.lt.s32.totalorder %v235_v40, 0  ;;  %v239_v62 = vxor.u32 2147483648, %v130_v55 }
  0x24   :  { %vm143_vm6 = vcmp.lt.s32.totalorder %v236_v41, 0  ;;  %v181_v47 = vsel %vm318_vm3, %v165_v26, 0.0  ;;  %v182_v48 = vsel %vm137_vm4, %v166_v27, 0.0  ;;  %v183_v49 = vsel %vm140_vm5, %v167_v32, 0.0 }
  0x25   :  { %v184_v50 = vsel %vm143_vm6, %v168_v33, 0.0  ;;  %v197_v51 = vrot.slane %v182_v48, 6  ;;  %v198_v53 = vrot.slane %v183_v49, 4  ;;  %v240_v63 = vxor.u32 2147483648, %v131_v56 }
  0x26   :  { %v199_v54 = vrot.slane %v184_v50, 2  ;;  %vm327_vm7 = vcmp.lt.s32.totalorder %v237_v46, 0  ;;  %vm149_vm8 = vcmp.lt.s32.totalorder %v238_v59, 0  ;;  %vm152_vm9 = vcmp.lt.s32.totalorder %v239_v62, 0 }
  0x27   :  { %v204_v58 = vsel %vm203_vm0, %v181_v47, %v197_v51  ;;  %vm155_vm10 = vcmp.lt.s32.totalorder %v240_v63, 0  ;;  %v186_v4 = vsel %vm149_vm8, %v170_v57, 0.0  ;;  %v187_v5 = vsel %vm152_vm9, %v171_v60, 0.0 }
  0x28   :  { %v206_v61 = vsel %vm205_vm1, %v198_v53, %v199_v54  ;;  %v188_v6 = vsel %vm155_vm10, %v172_v0, 0.0  ;;  %v200_v7 = vrot.slane %v186_v4, 6  ;;  %v185_v8 = vsel %vm327_vm7, %v169_v3, 0.0 }
  0x29   :  { %v208_v1 = vsel %vm207_vm2, %v204_v58, %v206_v61  ;;  %v201_v9 = vrot.slane %v187_v5, 4  ;;  %v202_v10 = vrot.slane %v188_v6, 2 }
  0x2a   :  { %214 = vst [vmem:[#allocation6] sm:$0xff] %v208_v1  ;;  %v209_v11 = vsel %vm203_vm0, %v185_v8, %v200_v7 }
  0x2b   :  { %v210_v12 = vsel %vm205_vm1, %v201_v9, %v202_v10 }
  0x2c   :  { %v211_v13 = vsel %vm207_vm2, %v209_v11, %v210_v12 }
  0x2d   :  { %215 = vst [vmem:[#allocation6 + $0x8] sm:$0xff] %v211_v13 }
  0x2e   :  { %226 = dma.vmem_to_hbm [thread:$0]  %s222_s1, 256, %s224_s18, [#allocation5]  }
  0x2f   :  { %293 = dma.done.wait [#allocation5], 256  }
  0x30   :  { %294 = vsyncadd [#allocation5], 4294967040 }
  0x31   :  { %231 = vsyncpa [#allocation4], 1 }
  0x32   :  { %232 = vsyncpa [#allocation5], 1 }

</bundles_post_ra>
